<compile_context>
chip_gen: v6e
topology: v6e:2x2x1
jax: 0.10.0
libtpu: 0.0.40
codegen_flags: <defaults>
</compile_context>

<pallas_src>
import functools

import jax
import jax.numpy as jnp
import numpy as np
from jax.experimental import pallas as pl
from jax.experimental.pallas import tpu as pltpu

# Config-equivalent constants (seq_model='1dcnn')
N_FRAMES = 31            # Conv1d out_channels = config.n_frames
KERNEL_SIZE = 3          # config.kernel_size_conv1d
STRIDE = 1               # config.stride_conv1d (this kernel requires stride 1)


def make_conv1d_im2col_kernel(B, L, K, L_out):
    """Build a single-invocation im2col conv kernel (all shapes static Python ints).

    x_ref: (C_in, B*L)       input, channels on sublanes, batch*length on lanes
    w_ref: (C_out, K*C_in)   weight flattened k-major to match the patch rows
    o_ref: (C_out, B*L_out)  lane-dense output slab
    """

    def kernel(x_ref, w_ref, o_ref):
        x = x_ref[...]                                   # (C_in, B*L), loaded once
        # im2col patch matrix: row r = k*C_in + c, col n = b*L_out + l.
        # K*B static lane-slices, built once per kernel call (the only
        # cross-lane shuffling in the kernel; everything else is one MXU op).
        per_k = []
        for k in range(K):
            per_b = [x[:, b * L + k: b * L + k + L_out] for b in range(B)]
            per_k.append(per_b[0] if B == 1 else jnp.concatenate(per_b, axis=1))
        patches = per_k[0] if K == 1 else jnp.concatenate(per_k, axis=0)
        # One MXU matmul for the whole batch and all taps (f32 accumulate).
        o_ref[...] = jnp.dot(
            w_ref[...], patches, preferred_element_type=jnp.float32
        ).astype(o_ref.dtype)

    return kernel


@functools.partial(jax.jit, static_argnames=())
def sequence_model_forward(x, weight):
    """Forward of SequenceModel('1dcnn').

    x:      (B, C_in, L)      f32, NCW like PyTorch
    weight: (C_out, C_in, K)  f32, PyTorch Conv1d weight layout
    returns (B, C_out, L_out) with L_out = L - K + 1 (valid conv, stride 1, no bias)
    """
    assert STRIDE == 1, "kernel implements stride_conv1d == 1 only"
    B, C_in, L = x.shape
    C_out, C_in_w, K = weight.shape
    assert C_in_w == C_in
    L_out = (L - K) // STRIDE + 1

    # Wrapper-side layout plumbing (pure data movement, no compute):
    #  - channels -> sublanes, (batch, length) folded onto the lane axis
    #  - weight flattened k-major: w2d[o, k*C_in + c] == weight[o, c, k]
    x2d = jnp.transpose(x, (1, 0, 2)).reshape(C_in, B * L)
    w2d = jnp.transpose(weight, (0, 2, 1)).reshape(C_out, K * C_in)

    out2d = pl.pallas_call(
        make_conv1d_im2col_kernel(B, L, K, L_out),
        out_shape=jax.ShapeDtypeStruct((C_out, B * L_out), x.dtype),
        in_specs=[
            pl.BlockSpec(memory_space=pltpu.MemorySpace.VMEM),
            pl.BlockSpec(memory_space=pltpu.MemorySpace.VMEM),
        ],
        out_specs=pl.BlockSpec(memory_space=pltpu.MemorySpace.VMEM),
    )(x2d, w2d)

    # (C_out, B*L_out) -> (B, C_out, L_out), matching PyTorch Conv1d output layout.
    return jnp.transpose(out2d.reshape(C_out, B, L_out), (1, 0, 2))


if __name__ == "__main__":
    key = jax.random.PRNGKey(0)
    kx, kw = jax.random.split(key)

    # Small shapes consistent with the forward: batch=2, in_channels(hidden)=32,
    # sequence length=16. LazyConv1d infers C_in=32 at first call.
    B, C_IN, L = 2, 32, 16
    x = jax.random.normal(kx, (B, C_IN, L), dtype=jnp.float32)

    # Deterministic weight init (synthetic; stands in for kaiming-uniform),
    # stored in PyTorch Conv1d layout (C_out, C_in, K).
    fan_in = C_IN * KERNEL_SIZE
    weight = jax.random.normal(
        kw, (N_FRAMES, C_IN, KERNEL_SIZE), dtype=jnp.float32
    ) * (1.0 / np.sqrt(fan_in))

    out = sequence_model_forward(x, weight)
    out = jax.block_until_ready(out)

    # Reference: XLA's conv with identical semantics (valid, stride 1, no bias).
    ref = jax.lax.conv_general_dilated(
        x, weight, window_strides=(STRIDE,), padding="VALID",
        dimension_numbers=("NCH", "OIH", "NCH"),
    )
    np.testing.assert_allclose(np.asarray(out), np.asarray(ref), rtol=1e-4, atol=1e-4)

    print("KERNEL_OK")
</pallas_src>

<mosaic_0001>
module attributes {stable_mosaic.version = 11 : i64} {
  func.func @kernel(%arg0: memref<32x32xf32, #tpu.memory_space<vmem>>, %arg1: memref<31x96xf32, #tpu.memory_space<vmem>>, %arg2: memref<31x28xf32, #tpu.memory_space<vmem>>) attributes {dimension_semantics = [], scalar_prefetch = 0 : i64, scratch_operands = 0 : i64, tpu.core_type = #tpu.core_type<tc>} {
    %c0 = arith.constant 0 : index
    %c0_0 = arith.constant 0 : index
    %0 = vector.load %arg0[%c0, %c0_0] : memref<32x32xf32, #tpu.memory_space<vmem>>, vector<32x32xf32>
    %1 = vector.extract_strided_slice %0 {offsets = [0, 0], sizes = [32, 14], strides = [1, 1]} : vector<32x32xf32> to vector<32x14xf32>
    %2 = vector.extract_strided_slice %0 {offsets = [0, 16], sizes = [32, 14], strides = [1, 1]} : vector<32x32xf32> to vector<32x14xf32>
    %3 = tpu.concatenate %1, %2 in 1 : vector<32x14xf32>, vector<32x14xf32> -> vector<32x28xf32>
    %4 = vector.extract_strided_slice %0 {offsets = [0, 1], sizes = [32, 14], strides = [1, 1]} : vector<32x32xf32> to vector<32x14xf32>
    %5 = vector.extract_strided_slice %0 {offsets = [0, 17], sizes = [32, 14], strides = [1, 1]} : vector<32x32xf32> to vector<32x14xf32>
    %6 = tpu.concatenate %4, %5 in 1 : vector<32x14xf32>, vector<32x14xf32> -> vector<32x28xf32>
    %7 = vector.extract_strided_slice %0 {offsets = [0, 2], sizes = [32, 14], strides = [1, 1]} : vector<32x32xf32> to vector<32x14xf32>
    %8 = vector.extract_strided_slice %0 {offsets = [0, 18], sizes = [32, 14], strides = [1, 1]} : vector<32x32xf32> to vector<32x14xf32>
    %9 = tpu.concatenate %7, %8 in 1 : vector<32x14xf32>, vector<32x14xf32> -> vector<32x28xf32>
    %10 = tpu.concatenate %3, %6, %9 in 0 : vector<32x28xf32>, vector<32x28xf32>, vector<32x28xf32> -> vector<96x28xf32>
    %c0_1 = arith.constant 0 : index
    %c0_2 = arith.constant 0 : index
    %11 = vector.load %arg1[%c0_1, %c0_2] : memref<31x96xf32, #tpu.memory_space<vmem>>, vector<31x96xf32>
    %cst = arith.constant dense<0.000000e+00> : vector<31x28xf32>
    %12 = tpu.matmul %11, %10, %cst {dimension_numbers = #tpu.dot_dimension_numbers<[1], [0], [0], [1], [0, 0, 1, 1], [], []>} : vector<31x96xf32>, vector<96x28xf32>, vector<31x28xf32> -> vector<31x28xf32>
    %c0_3 = arith.constant 0 : index
    %c0_4 = arith.constant 0 : index
    %13 = vector.load %arg2[%c0_3, %c0_4] : memref<31x28xf32, #tpu.memory_space<vmem>>, vector<31x28xf32>
    tpu.vector_store %arg2[%c0_3, %c0_4], %12 {strides = array<i32>} : memref<31x28xf32, #tpu.memory_space<vmem>>, vector<31x28xf32>,
    return
  }
}

</mosaic_0001>

<bundles_post_ra>
// kernel: sequence_model_forward.1
= control target key start
LH: loop header
LB: loop body
LE: loop exit
PB: predicated region body
PF: predicated region fallthrough
CT: control target
= control target key end

     0   :  { %s270_s13 = smov 126   ;;  %s271_s14 = smov 124   ;;  %vm84_vm0 = vcmask 785408   ;;  %vm31_vm1 = vcmask 113664   ;;  %vm182_vm2 = vcmask 228352   ;;  %vm186_vm3 = vcmask 227328   ;;  %s369_s0 = inlined_call_operand.vmem [shape: f32[32,32], index: 0, kind: input, shape index: {}]   ;;  %s370_s1 = inlined_call_operand.vmem [shape: f32[31,96], index: 1, kind: input, shape index: {}]   ;;  %s371_s2 = inlined_call_operand.vmem [shape: f32[31,28], index: 2, kind: output, shape index: {}]  }
   0x1   :  { %v292_v0 = vld [vmem:[%s369_s0 + $0x18] sm:$0xff]  ;;  %v297_v1 = vld [vmem:[%s369_s0 + $0x10] sm:$0xff]  ;;  %v306_v2 = vld [vmem:[%s369_s0 + $0x8] sm:$0xff]  ;;  %s272_s19 = smov 125   ;;  %s273_s20 = smov 127  }
   0x2   :  { %25 = vrot.lane.b32.xlu0 %v292_v0, %s270_s13  ;;  %23 = vrot.lane.b32.xlu1 %v297_v1, %s270_s13  ;;  %v313_v3 = vld [vmem:[%s369_s0] sm:$0xff]  ;;  %v82_v5 = vld [vmem:[%s370_s1 + $0x10] sm:$0xff] }
   0x3   :  { %v80_v4 = vld [vmem:[%s370_s1] sm:$0xff]  ;;  %239 = vmatprep.mubr.msk.f32.mxu1 %vm84_vm0, %v82_v5  ;;  %v81_v34 = vld [vmem:[%s370_s1 + $0x8] sm:$0xff]  ;;  %v83_v35 = vld [vmem:[%s370_s1 + $0x18] sm:$0x7f] }
   0x4   :  { %236 = vmatprep.mubr.msk.f32.mxu0 %vm84_vm0, %v80_v4 }
   0x6   :  { %70 = vrot.lane.b32.xlu0 %v292_v0, %s271_s14  ;;  %68 = vrot.lane.b32.xlu1 %v297_v1, %s271_s14 }
   0xa   :  { %66 = vrot.lane.b32.xlu1 %v306_v2, %s271_s14  ;;  %21 = vrot.lane.b32.xlu0 %v306_v2, %s270_s13 }
   0xe   :  { %64 = vrot.lane.b32.xlu1 %v313_v3, %s271_s14  ;;  %19 = vrot.lane.b32.xlu0 %v313_v3, %s270_s13 }
  0x12   :  { %54 = vrot.lane.b32.xlu1 %v292_v0, %s272_s19  ;;  %42 = vrot.lane.b32.xlu0 %v292_v0, %s273_s20 }
  0x16   :  { %52 = vrot.lane.b32.xlu1 %v297_v1, %s272_s19  ;;  %40 = vrot.lane.b32.xlu0 %v297_v1, %s273_s20 }
  0x1a   :  { %50 = vrot.lane.b32.xlu1 %v306_v2, %s272_s19  ;;  %38 = vrot.lane.b32.xlu0 %v306_v2, %s273_s20 }
  0x1e   :  { %48 = vrot.lane.b32.xlu1 %v313_v3, %s272_s19  ;;  %36 = vrot.lane.b32.xlu0 %v313_v3, %s273_s20 }
  0x74   :  { %v26_v6 = vpop.permute.xlu0 %25  ;;  %v24_v7 = vpop.permute.xlu1 %23 }
  0x75   :  { %v35_v30 = vsel %vm31_vm1, %v292_v0, %v26_v6  ;;  %v34_v31 = vsel %vm31_vm1, %v297_v1, %v24_v7 }
  0x78   :  { %v71_v8 = vpop.permute.xlu0 %70  ;;  %v69_v9 = vpop.permute.xlu1 %68 }
  0x79   :  { %v79_v10 = vsel %vm31_vm1, %v26_v6, %v71_v8  ;;  %v78_v11 = vsel %vm31_vm1, %v24_v7, %v69_v9 }
  0x7a   :  { %212 = vmatprep.subr.mxu0 %v79_v10  ;;  %242 = vmatprep.subr.mxu1 %v79_v10 }
  0x7b   :  { %213 = vmatpush3.msra.mxu0 %v79_v10  ;;  %254 = vmatpush3.msra.mxu1 %v79_v10 }
  0x7c   :  { %214 = vmatprep.subr.mxu0 %v78_v11  ;;  %243 = vmatprep.subr.mxu1 %v78_v11  ;;  %v67_v12 = vpop.permute.xlu1 %66  ;;  %v22_v13 = vpop.permute.xlu0 %21 }
  0x7d   :  { %v77_v14 = vsel %vm31_vm1, %v22_v13, %v67_v12  ;;  %215 = vmatpush3.msra.mxu0 %v78_v11  ;;  %255 = vmatpush3.msra.mxu1 %v78_v11  ;;  %v33_v32 = vsel %vm31_vm1, %v306_v2, %v22_v13 }
  0x7e   :  { %216 = vmatprep.subr.mxu0 %v77_v14  ;;  %244 = vmatprep.subr.mxu1 %v77_v14 }
  0x7f   :  { %217 = vmatpush3.msra.mxu0 %v77_v14  ;;  %256 = vmatpush3.msra.mxu1 %v77_v14 }
  0x80   :  { %v65_v15 = vpop.permute.xlu1 %64  ;;  %v20_v16 = vpop.permute.xlu0 %19 }
  0x81   :  { %v76_v17 = vsel %vm31_vm1, %v20_v16, %v65_v15  ;;  %v32_v33 = vsel %vm31_vm1, %v313_v3, %v20_v16 }
  0x82   :  { %218 = vmatprep.subr.mxu0 %v76_v17  ;;  %245 = vmatprep.subr.mxu1 %v76_v17 }
  0x83   :  { %219 = vmatpush3.msra.mxu0 %v76_v17  ;;  %257 = vmatpush3.msra.mxu1 %v76_v17 }
  0x84   :  { %v55_v18 = vpop.permute.xlu1 %54  ;;  %v43_v19 = vpop.permute.xlu0 %42 }
  0x85   :  { %v63_v20 = vsel %vm31_vm1, %v43_v19, %v55_v18 }
  0x86   :  { %220 = vmatprep.subr.mxu0 %v63_v20  ;;  %246 = vmatprep.subr.mxu1 %v63_v20 }
  0x87   :  { %221 = vmatpush3.msra.mxu0 %v63_v20  ;;  %258 = vmatpush3.msra.mxu1 %v63_v20 }
  0x88   :  { %v53_v21 = vpop.permute.xlu1 %52  ;;  %v41_v22 = vpop.permute.xlu0 %40 }
  0x89   :  { %v62_v23 = vsel %vm31_vm1, %v41_v22, %v53_v21 }
  0x8a   :  { %222 = vmatprep.subr.mxu0 %v62_v23  ;;  %247 = vmatprep.subr.mxu1 %v62_v23 }
  0x8b   :  { %223 = vmatpush3.msra.mxu0 %v62_v23  ;;  %259 = vmatpush3.msra.mxu1 %v62_v23 }
  0x8c   :  { %v51_v24 = vpop.permute.xlu1 %50  ;;  %v39_v25 = vpop.permute.xlu0 %38 }
  0x8d   :  { %v61_v26 = vsel %vm31_vm1, %v39_v25, %v51_v24 }
  0x8e   :  { %224 = vmatprep.subr.mxu0 %v61_v26  ;;  %248 = vmatprep.subr.mxu1 %v61_v26 }
  0x8f   :  { %225 = vmatpush3.msra.mxu0 %v61_v26  ;;  %260 = vmatpush3.msra.mxu1 %v61_v26 }
  0x90   :  { %v49_v27 = vpop.permute.xlu1 %48  ;;  %v37_v28 = vpop.permute.xlu0 %36 }
  0x91   :  { %v60_v29 = vsel %vm31_vm1, %v37_v28, %v49_v27 }
  0x92   :  { %226 = vmatprep.subr.mxu0 %v60_v29  ;;  %249 = vmatprep.subr.mxu1 %v60_v29 }
  0x93   :  { %227 = vmatpush3.msra.mxu0 %v60_v29  ;;  %261 = vmatpush3.msra.mxu1 %v60_v29 }
  0x94   :  { %228 = vmatprep.subr.mxu0 %v35_v30  ;;  %250 = vmatprep.subr.mxu1 %v35_v30 }
  0x95   :  { %229 = vmatpush3.msra.mxu0 %v35_v30  ;;  %262 = vmatpush3.msra.mxu1 %v35_v30 }
  0x96   :  { %230 = vmatprep.subr.mxu0 %v34_v31  ;;  %251 = vmatprep.subr.mxu1 %v34_v31 }
  0x97   :  { %231 = vmatpush3.msra.mxu0 %v34_v31  ;;  %263 = vmatpush3.msra.mxu1 %v34_v31 }
  0x98   :  { %232 = vmatprep.subr.mxu0 %v33_v32  ;;  %252 = vmatprep.subr.mxu1 %v33_v32 }
  0x99   :  { %233 = vmatpush3.msra.mxu0 %v33_v32  ;;  %264 = vmatpush3.msra.mxu1 %v33_v32 }
  0x9a   :  { %234 = vmatprep.subr.mxu0 %v32_v33  ;;  %253 = vmatprep.subr.mxu1 %v32_v33 }
  0x9b   :  { %235 = vmatpush3.msra.mxu0 %v32_v33  ;;  %265 = vmatpush3.msra.mxu1 %v32_v33 }
  0x9c   :  { %237 = vmatmul.mubr.msk.f32.vlgmr.msra.gmra.mxu0 %vm84_vm0, %v81_v34  ;;  %240 = vmatmul.mubr.msk.f32.vlgmr.msra.gmra.mxu1 %vm84_vm0, %v83_v35 }
 0x15c   :  { %v238_v36 = vpop.f32.mrf.mxu0  ;;  %v241_v37 = vpop.f32.mrf.mxu1 }
 0x15d   :  { %184 = vst.msk [vmem:[%s371_s2 + $0x8] sm:$0xff] %vm182_vm2, %v238_v36 }
 0x15e   :  { %187 = vst.msk [vmem:[%s371_s2 + $0x18] sm:$0x7f] %vm186_vm3, %v241_v37  ;;  %v163_v38 = vpop.f32.mrf.mxu0  ;;  %v173_v39 = vpop.f32.mrf.mxu1 }
 0x15f   :  { %183 = vst.msk [vmem:[%s371_s2] sm:$0xff] %vm182_vm2, %v163_v38  ;;  %185 = vst.msk [vmem:[%s371_s2 + $0x10] sm:$0xff] %vm182_vm2, %v173_v39 }

</bundles_post_ra>
